<compile_context>
chip_gen: v6e
topology: v6e:2x2x1
jax: 0.10.0
libtpu: 0.0.40
codegen_flags: <defaults>
</compile_context>

<pallas_src>
import jax
import jax.numpy as jnp
from jax import lax
from jax.experimental import pallas as pl
from jax.experimental.pallas import tpu as pltpu


_SQRT_HALF = 0.7071067811865476
_LN_EPS = 1e-5


def _round_up(x, m):
    return (x + m - 1) // m * m


def _row_align(dtype):
    # Minimum sublane multiple for the second-to-last dim of a tile.
    itemsize = jnp.dtype(dtype).itemsize
    return {4: 8, 2: 16, 1: 32}.get(itemsize, 8)


def _pick_tn(v_pad, cap):
    """Largest multiple of 128 <= cap that divides v_pad (v_pad % 128 == 0)."""
    tn = min(max(128, (cap // 128) * 128), v_pad)
    while v_pad % tn != 0:
        tn -= 128
    return tn


def _vmem_budget_bytes():
    """Usable per-core VMEM: physical capacity minus headroom."""
    cap = None
    try:  # hardware query only; never wraps the kernel build
        cap = getattr(pltpu.get_tpu_info(), "vmem_capacity_bytes", None)
    except Exception:
        cap = None
    if not cap:
        cap = 64 << 20  # conservative fallback = v7x per-TensorCore VMEM
    return int(cap) - (8 << 20)


def _mlm_head_kernel(x_ref, w1_ref, b1_ref, g_ref, beta_ref, w2_ref, b2_ref,
                     o_ref, acts_ref):
    """One (row-tile i, vocab-slab j) grid step."""

    @pl.when(pl.program_id(1) == 0)
    def _():
        # Linear 1 -- native-dtype operands on the MXU, f32 accumulation.
        h = jnp.dot(x_ref[...], w1_ref[...], preferred_element_type=jnp.float32)
        h = h + b1_ref[...].astype(jnp.float32)
        # Exact GELU (torch.nn.GELU default): 0.5*x*(1 + erf(x/sqrt(2))).
        h = 0.5 * h * (1.0 + lax.erf(h * jnp.float32(_SQRT_HALF)))
        # LayerNorm over the hidden dim, eps = 1e-5 (torch default).
        mean = jnp.mean(h, axis=-1, keepdims=True)
        centered = h - mean
        var = jnp.mean(centered * centered, axis=-1, keepdims=True)
        hn = centered * lax.rsqrt(var + jnp.float32(_LN_EPS))
        hn = hn * g_ref[...].astype(jnp.float32) + beta_ref[...].astype(jnp.float32)
        acts_ref[...] = hn.astype(acts_ref.dtype)

    # Linear 2 -- one vocab slab of logits; pure MXU + bias + lane-dense store.
    out = jnp.dot(acts_ref[...], w2_ref[...], preferred_element_type=jnp.float32)
    out = out + b2_ref[...].astype(jnp.float32)
    o_ref[...] = out.astype(o_ref.dtype)


def conv_net_only_mlm_head(hidden_state, params, *, tile_m=1024, tile_n=1024,
                           compute_dtype=jnp.bfloat16, out_dtype=None):
    """hidden_state: (..., H) -> logits (..., V).

    compute_dtype: dtype of the Linear-2 operands (LN'd activation cache and the
    streamed W2 slabs); accumulation is always f32.  Use jnp.float32 for exact
    f32 semantics; jnp.bfloat16 (default) for bf16-rate MXU + half the W2 HBM
    traffic.  For zero per-call weight copies store w2 pre-padded (V % 128 == 0)
    in compute_dtype.
    """
    w1, b1, gamma, beta, w2, b2 = (
        params["w1"], params["b1"], params["gamma"], params["beta"],
        params["w2"], params["b2"],
    )
    orig_shape = hidden_state.shape
    H = orig_shape[-1]
    V = w2.shape[1]
    M = 1
    for d in orig_shape[:-1]:
        M *= d
    out_dtype = hidden_state.dtype if out_dtype is None else out_dtype

    x2d = hidden_state.reshape(M, H)

    it_x = jnp.dtype(hidden_state.dtype).itemsize
    it_w1 = jnp.dtype(w1.dtype).itemsize
    it_c = jnp.dtype(compute_dtype).itemsize     # acts cache + W2 as streamed
    it_o = jnp.dtype(out_dtype).itemsize

    # ---- tile selection ----------------------------------------------------
    # Sublane alignment for the second-to-last dim of every (tm, *) tile.
    ra = max(_row_align(hidden_state.dtype), _row_align(compute_dtype),
             _row_align(out_dtype))
    tm = max(ra, min(_round_up(tile_m, ra), _round_up(M, ra)))
    # Keep >= 2 row tiles whenever M allows so the "parallel" row axis can
    # shard across v7x's two TensorCores.
    if M >= 2 * ra:
        tm = min(tm, _round_up(-(-M // 2), ra))

    # Pad vocab only to a lane multiple; pick tn as a divisor of V_pad so there
    # is no tn-wide padding copy of W2 and no wasted vocab columns of MXU work.
    V_pad = _round_up(V, 128)
    tn = _pick_tn(V_pad, _round_up(tile_n, 128))

    # Fit the tile plan into the actual per-core VMEM budget (v7x: 64 MiB).
    def vmem_est(tm_, tn_):
        return (2 * tm_ * H * it_x          # x row tiles (double-buffered)
                + 2 * H * H * it_w1         # W1 (resident constant, 2 buffers)
                + 2 * 3 * H * it_w1         # b1, gamma, beta
                + 2 * H * tn_ * it_c        # W2 vocab slabs
                + 2 * tn_ * 4               # b2 vocab slabs
                + 2 * tm_ * tn_ * it_o      # output logits tiles
                + tm_ * H * it_c)           # LN'd activation scratch

    budget = _vmem_budget_bytes()
    while vmem_est(tm, tn) > budget and tn > 128:
        tn = _pick_tn(V_pad, tn - 128)
    while vmem_est(tm, tn) > budget and tm > ra:
        tm = max(ra, _round_up(tm // 2, ra))
    # TODO(synk): for very large H (f32 W1 alone near the v7x VMEM budget) add a
    # K-tiled inner loop over W1 instead of keeping it VMEM-resident.

    M_pad = _round_up(M, tm)
    if M_pad != M:
        x2d = jnp.pad(x2d, ((0, M_pad - M), (0, 0)))

    w2k = w2 if V_pad == V else jnp.pad(w2, ((0, 0), (0, V_pad - V)))
    if w2k.dtype != jnp.dtype(compute_dtype):
        w2k = w2k.astype(compute_dtype)
    b2p = b2 if V_pad == V else jnp.pad(b2, ((0, V_pad - V),))

    b1_2d = b1.reshape(1, H)
    g_2d = gamma.reshape(1, H)
    be_2d = beta.reshape(1, H)
    b2_2d = b2p.reshape(1, V_pad)

    grid = (M_pad // tm, V_pad // tn)

    # Advisory cost estimate for XLA's scheduler.
    cost = pl.CostEstimate(
        flops=2 * M_pad * H * (H + V_pad),
        transcendentals=M_pad * H,
        bytes_accessed=(M_pad * H * it_x + H * H * it_w1
                        + grid[0] * (H * V_pad + V_pad) * it_c
                        + M_pad * V_pad * it_o),
    )

    vmem_limit = int(min(max(vmem_est(tm, tn) * 5 // 4 + (2 << 20), 32 << 20),
                         budget))

    out2d = pl.pallas_call(
        _mlm_head_kernel,
        out_shape=jax.ShapeDtypeStruct((M_pad, V_pad), out_dtype),
        grid_spec=pltpu.PrefetchScalarGridSpec(
            num_scalar_prefetch=0,
            grid=grid,
            in_specs=[
                pl.BlockSpec((tm, H), lambda i, j: (i, 0)),   # x rows (vary with i)
                pl.BlockSpec((H, H), lambda i, j: (0, 0)),    # W1 (constant)
                pl.BlockSpec((1, H), lambda i, j: (0, 0)),    # b1
                pl.BlockSpec((1, H), lambda i, j: (0, 0)),    # LN gamma
                pl.BlockSpec((1, H), lambda i, j: (0, 0)),    # LN beta
                pl.BlockSpec((H, tn), lambda i, j: (0, j)),   # W2 vocab slab
                pl.BlockSpec((1, tn), lambda i, j: (0, j)),   # b2 vocab slab
            ],
            out_specs=pl.BlockSpec((tm, tn), lambda i, j: (i, j)),
            scratch_shapes=[pltpu.VMEM((tm, H), compute_dtype)],
        ),
        compiler_params=pltpu.CompilerParams(
            dimension_semantics=("parallel", "arbitrary"),
            vmem_limit_bytes=vmem_limit,
        ),
        cost_estimate=cost,
    )(x2d, w1, b1_2d, g_2d, be_2d, w2k, b2_2d)

    out2d = out2d[:M, :V]
    return out2d.reshape(*orig_shape[:-1], V)


def init_params(key, hidden_size, vocab_size, dtype=jnp.float32):
    k1, k2, k3, k4 = jax.random.split(key, 4)
    s = 1.0 / float(hidden_size) ** 0.5
    return {
        "w1": jax.random.uniform(k1, (hidden_size, hidden_size), dtype, -s, s),
        "b1": jax.random.uniform(k2, (hidden_size,), dtype, -s, s),
        "gamma": jnp.ones((hidden_size,), dtype),
        "beta": jnp.zeros((hidden_size,), dtype),
        "w2": jax.random.uniform(k3, (hidden_size, vocab_size), dtype, -s, s),
        "b2": jax.random.uniform(k4, (vocab_size,), dtype, -s, s),
    }


def _reference(hidden_state, params, compute_dtype=jnp.float32):
    """Pure-JAX reference; mirrors the kernel's compute_dtype rounding exactly."""
    x = hidden_state.astype(jnp.float32)
    w1 = params["w1"].astype(jnp.float32)
    b1 = params["b1"].astype(jnp.float32)
    b2 = params["b2"].astype(jnp.float32)
    h = jnp.dot(x, w1, precision=lax.Precision.HIGHEST) + b1
    h = 0.5 * h * (1.0 + lax.erf(h * _SQRT_HALF))
    mean = jnp.mean(h, axis=-1, keepdims=True)
    var = jnp.mean((h - mean) ** 2, axis=-1, keepdims=True)
    hn = (h - mean) * lax.rsqrt(var + _LN_EPS)
    hn = hn * params["gamma"].astype(jnp.float32) + params["beta"].astype(jnp.float32)
    hn_c = hn.astype(compute_dtype).astype(jnp.float32)
    w2_c = params["w2"].astype(compute_dtype).astype(jnp.float32)
    out = jnp.dot(hn_c, w2_c, precision=lax.Precision.HIGHEST) + b2
    return out.astype(hidden_state.dtype)


if __name__ == "__main__":
    key = jax.random.PRNGKey(0)
    kx, kp, kx2, kp2 = jax.random.split(key, 4)

    # Test 1: the module's natural small shapes, default (bf16) hot-loop dtype.
    batch, seq, hidden, vocab = 2, 8, 32, 128
    hidden_state = jax.random.normal(kx, (batch, seq, hidden), jnp.float32)
    params = init_params(kp, hidden, vocab)

    logits = conv_net_only_mlm_head(hidden_state, params)
    jax.block_until_ready(logits)
    ref = _reference(hidden_state, params, compute_dtype=jnp.bfloat16)
    assert logits.shape == (batch, seq, vocab)
    err = float(jnp.max(jnp.abs(logits.astype(jnp.float32) - ref.astype(jnp.float32))))
    assert jnp.allclose(logits, ref, atol=2e-3, rtol=2e-3), err

    # Test 2: non-divisible shapes + tiny explicit tiles to exercise the 2-D
    # grid, row/vocab padding, scratch reuse across vocab slabs, and the exact
    # f32 compute path.
    b2_, s2_, h2_, v2_ = 2, 37, 32, 200
    hidden_state2 = jax.random.normal(kx2, (b2_, s2_, h2_), jnp.float32)
    params2 = init_params(kp2, h2_, v2_)

    logits2 = conv_net_only_mlm_head(hidden_state2, params2, tile_m=32,
                                     tile_n=128, compute_dtype=jnp.float32)
    jax.block_until_ready(logits2)
    ref2 = _reference(hidden_state2, params2, compute_dtype=jnp.float32)
    assert logits2.shape == (b2_, s2_, v2_)
    err2 = float(jnp.max(jnp.abs(logits2 - ref2)))
    assert jnp.allclose(logits2, ref2, atol=2e-3, rtol=2e-3), err2

    print("KERNEL_OK")
</pallas_src>

<mosaic_0001>
module attributes {stable_mosaic.version = 11 : i64} {
  func.func @_mlm_head_kernel(%arg0: i32, %arg1: i32, %arg2: memref<16x32xf32, #tpu.memory_space<vmem>>, %arg3: memref<32x32xf32, #tpu.memory_space<vmem>>, %arg4: memref<1x32xf32, #tpu.memory_space<vmem>>, %arg5: memref<1x32xf32, #tpu.memory_space<vmem>>, %arg6: memref<1x32xf32, #tpu.memory_space<vmem>>, %arg7: memref<32x128xbf16, #tpu.memory_space<vmem>>, %arg8: memref<1x128xf32, #tpu.memory_space<vmem>>, %arg9: memref<16x128xf32, #tpu.memory_space<vmem>>, %arg10: memref<16x32xbf16, #tpu.memory_space<vmem>>) attributes {dimension_semantics = [#tpu.dimension_semantics<parallel>, #tpu.dimension_semantics<arbitrary>], iteration_bounds = array<i64: 1, 1>, scalar_prefetch = 0 : i64, scratch_operands = 1 : i64, tpu.core_type = #tpu.core_type<tc>, window_params = [{transform_indices = @transform_0, window_bounds = array<i64: 16, 32>}, {pipeline_mode = #tpu.pipeline_mode<synchronous>, transform_indices = @transform_1, window_bounds = array<i64: 32, 32>}, {pipeline_mode = #tpu.pipeline_mode<synchronous>, transform_indices = @transform_2, window_bounds = array<i64: 1, 32>}, {pipeline_mode = #tpu.pipeline_mode<synchronous>, transform_indices = @transform_3, window_bounds = array<i64: 1, 32>}, {pipeline_mode = #tpu.pipeline_mode<synchronous>, transform_indices = @transform_4, window_bounds = array<i64: 1, 32>}, {transform_indices = @transform_5, window_bounds = array<i64: 32, 128>}, {transform_indices = @transform_6, window_bounds = array<i64: 1, 128>}, {transform_indices = @transform_7, window_bounds = array<i64: 16, 128>}]} {
    %c0_i32 = arith.constant 0 : i32
    %0 = arith.cmpi eq, %arg1, %c0_i32 : i32
    %1 = arith.extui %0 : i1 to i32
    %c0_i32_0 = arith.constant 0 : i32
    %2 = arith.cmpi ne, %1, %c0_i32_0 : i32
    scf.if %2 {
      %c0_8 = arith.constant 0 : index
      %c0_9 = arith.constant 0 : index
      %10 = vector.load %arg2[%c0_8, %c0_9] : memref<16x32xf32, #tpu.memory_space<vmem>>, vector<16x32xf32>
      %c0_10 = arith.constant 0 : index
      %c0_11 = arith.constant 0 : index
      %11 = vector.load %arg3[%c0_10, %c0_11] : memref<32x32xf32, #tpu.memory_space<vmem>>, vector<32x32xf32>
      %cst_12 = arith.constant dense<0.000000e+00> : vector<16x32xf32>
      %12 = tpu.matmul %10, %11, %cst_12 {dimension_numbers = #tpu.dot_dimension_numbers<[1], [0], [0], [1], [0, 0, 1, 1], [], []>} : vector<16x32xf32>, vector<32x32xf32>, vector<16x32xf32> -> vector<16x32xf32>
      %c0_13 = arith.constant 0 : index
      %c0_14 = arith.constant 0 : index
      %13 = vector.load %arg4[%c0_13, %c0_14] : memref<1x32xf32, #tpu.memory_space<vmem>>, vector<1x32xf32>
      %14 = vector.broadcast %13 : vector<1x32xf32> to vector<16x32xf32>
      %15 = arith.addf %12, %14 : vector<16x32xf32>
      %cst_15 = arith.constant 5.000000e-01 : f32
      %16 = vector.broadcast %cst_15 : f32 to vector<16x32xf32>
      %17 = arith.mulf %16, %15 : vector<16x32xf32>
      %cst_16 = arith.constant 0.707106769 : f32
      %18 = vector.broadcast %cst_16 : f32 to vector<16x32xf32>
      %19 = arith.mulf %15, %18 : vector<16x32xf32>
      %20 = math.erf %19 : vector<16x32xf32>
      %cst_17 = arith.constant 1.000000e+00 : f32
      %21 = vector.broadcast %cst_17 : f32 to vector<16x32xf32>
      %22 = arith.addf %21, %20 : vector<16x32xf32>
      %23 = arith.mulf %17, %22 : vector<16x32xf32>
      %cst_18 = arith.constant dense<0.000000e+00> : vector<16xf32>
      %24 = vector.multi_reduction <add>, %23, %cst_18 [1] : vector<16x32xf32> to vector<16xf32>
      %25 = vector.shape_cast %24 : vector<16xf32> to vector<16x1xf32>
      %cst_19 = arith.constant 3.200000e+01 : f32
      %26 = vector.broadcast %cst_19 : f32 to vector<16x1xf32>
      %27 = arith.divf %25, %26 : vector<16x1xf32>
      %28 = vector.broadcast %27 : vector<16x1xf32> to vector<16x32xf32>
      %29 = arith.subf %23, %28 : vector<16x32xf32>
      %30 = arith.mulf %29, %29 : vector<16x32xf32>
      %cst_20 = arith.constant dense<0.000000e+00> : vector<16xf32>
      %31 = vector.multi_reduction <add>, %30, %cst_20 [1] : vector<16x32xf32> to vector<16xf32>
      %32 = vector.shape_cast %31 : vector<16xf32> to vector<16x1xf32>
      %cst_21 = arith.constant 3.200000e+01 : f32
      %33 = vector.broadcast %cst_21 : f32 to vector<16x1xf32>
      %34 = arith.divf %32, %33 : vector<16x1xf32>
      %cst_22 = arith.constant 9.99999974E-6 : f32
      %35 = vector.broadcast %cst_22 : f32 to vector<16x1xf32>
      %36 = arith.addf %34, %35 : vector<16x1xf32>
      %37 = math.rsqrt %36 : vector<16x1xf32>
      %38 = vector.broadcast %37 : vector<16x1xf32> to vector<16x32xf32>
      %39 = arith.mulf %29, %38 : vector<16x32xf32>
      %c0_23 = arith.constant 0 : index
      %c0_24 = arith.constant 0 : index
      %40 = vector.load %arg5[%c0_23, %c0_24] : memref<1x32xf32, #tpu.memory_space<vmem>>, vector<1x32xf32>
      %41 = vector.broadcast %40 : vector<1x32xf32> to vector<16x32xf32>
      %42 = arith.mulf %39, %41 : vector<16x32xf32>
      %c0_25 = arith.constant 0 : index
      %c0_26 = arith.constant 0 : index
      %43 = vector.load %arg6[%c0_25, %c0_26] : memref<1x32xf32, #tpu.memory_space<vmem>>, vector<1x32xf32>
      %44 = vector.broadcast %43 : vector<1x32xf32> to vector<16x32xf32>
      %45 = arith.addf %42, %44 : vector<16x32xf32>
      %46 = arith.truncf %45 : vector<16x32xf32> to vector<16x32xbf16>
      %c0_27 = arith.constant 0 : index
      %c0_28 = arith.constant 0 : index
      %47 = vector.load %arg10[%c0_27, %c0_28] : memref<16x32xbf16, #tpu.memory_space<vmem>>, vector<16x32xbf16>
      tpu.vector_store %arg10[%c0_27, %c0_28], %46 {strides = array<i32>} : memref<16x32xbf16, #tpu.memory_space<vmem>>, vector<16x32xbf16>,
    } else {
    }
    %c0 = arith.constant 0 : index
    %c0_1 = arith.constant 0 : index
    %3 = vector.load %arg10[%c0, %c0_1] : memref<16x32xbf16, #tpu.memory_space<vmem>>, vector<16x32xbf16>
    %c0_2 = arith.constant 0 : index
    %c0_3 = arith.constant 0 : index
    %4 = vector.load %arg7[%c0_2, %c0_3] : memref<32x128xbf16, #tpu.memory_space<vmem>>, vector<32x128xbf16>
    %cst = arith.constant dense<0.000000e+00> : vector<16x128xf32>
    %5 = tpu.matmul %3, %4, %cst {dimension_numbers = #tpu.dot_dimension_numbers<[1], [0], [0], [1], [0, 0, 1, 1], [], []>} : vector<16x32xbf16>, vector<32x128xbf16>, vector<16x128xf32> -> vector<16x128xf32>
    %c0_4 = arith.constant 0 : index
    %c0_5 = arith.constant 0 : index
    %6 = vector.load %arg8[%c0_4, %c0_5] : memref<1x128xf32, #tpu.memory_space<vmem>>, vector<1x128xf32>
    %7 = vector.broadcast %6 : vector<1x128xf32> to vector<16x128xf32>
    %8 = arith.addf %5, %7 : vector<16x128xf32>
    %c0_6 = arith.constant 0 : index
    %c0_7 = arith.constant 0 : index
    %9 = vector.load %arg9[%c0_6, %c0_7] : memref<16x128xf32, #tpu.memory_space<vmem>>, vector<16x128xf32>
    tpu.vector_store %arg9[%c0_6, %c0_7], %8 {strides = array<i32>} : memref<16x128xf32, #tpu.memory_space<vmem>>, vector<16x128xf32>,
    return
  }
  func.func @transform_0(%arg0: i32, %arg1: i32) -> (i32, i32) {
    %c0_i32 = arith.constant 0 : i32
    %c0_i32_0 = arith.constant 0 : i32
    return %arg0, %c0_i32 : i32, i32
  }
  func.func @transform_1(%arg0: i32, %arg1: i32) -> (i32, i32) {
    %c0_i32 = arith.constant 0 : i32
    %c0_i32_0 = arith.constant 0 : i32
    %c0_i32_1 = arith.constant 0 : i32
    return %c0_i32, %c0_i32_0 : i32, i32
  }
  func.func @transform_2(%arg0: i32, %arg1: i32) -> (i32, i32) {
    %c0_i32 = arith.constant 0 : i32
    %c0_i32_0 = arith.constant 0 : i32
    %c0_i32_1 = arith.constant 0 : i32
    return %c0_i32, %c0_i32_0 : i32, i32
  }
  func.func @transform_3(%arg0: i32, %arg1: i32) -> (i32, i32) {
    %c0_i32 = arith.constant 0 : i32
    %c0_i32_0 = arith.constant 0 : i32
    %c0_i32_1 = arith.constant 0 : i32
    return %c0_i32, %c0_i32_0 : i32, i32
  }
  func.func @transform_4(%arg0: i32, %arg1: i32) -> (i32, i32) {
    %c0_i32 = arith.constant 0 : i32
    %c0_i32_0 = arith.constant 0 : i32
    %c0_i32_1 = arith.constant 0 : i32
    return %c0_i32, %c0_i32_0 : i32, i32
  }
  func.func @transform_5(%arg0: i32, %arg1: i32) -> (i32, i32) {
    %c0_i32 = arith.constant 0 : i32
    %c0_i32_0 = arith.constant 0 : i32
    return %c0_i32, %arg1 : i32, i32
  }
  func.func @transform_6(%arg0: i32, %arg1: i32) -> (i32, i32) {
    %c0_i32 = arith.constant 0 : i32
    %c0_i32_0 = arith.constant 0 : i32
    return %c0_i32, %arg1 : i32, i32
  }
  func.func @transform_7(%arg0: i32, %arg1: i32) -> (i32, i32) {
    %c0_i32 = arith.constant 0 : i32
    return %arg0, %arg1 : i32, i32
  }
}

</mosaic_0001>

<bundles_post_ra>
// kernel: tpu_custom_call.1
= control target key start
LH: loop header
LB: loop body
LE: loop exit
PB: predicated region body
PF: predicated region fallthrough
CT: control target
= control target key end

     0   :  { %12 = vsyncpa [#allocation4], 0  ;;  %s568_s0 = inlined_call_operand.hbm [shape: f32[16,32], index: 0, kind: input, shape index: {}]   ;;  %s569_s1 = inlined_call_operand.hbm [shape: f32[32,32], index: 1, kind: input, shape index: {}]   ;;  %s570_s2 = inlined_call_operand.vmem [shape: f32[1,32], index: 2, kind: input, shape index: {}]   ;;  %s571_s3 = inlined_call_operand.vmem [shape: f32[1,32], index: 3, kind: input, shape index: {}]   ;;  %s572_s4 = inlined_call_operand.vmem [shape: f32[1,32], index: 4, kind: input, shape index: {}]   ;;  %s573_s5 = inlined_call_operand.hbm [shape: bf16[32,128], index: 5, kind: input, shape index: {}]   ;;  %s574_s6 = inlined_call_operand.vmem [shape: f32[1,128], index: 6, kind: input, shape index: {}]   ;;  %s575_s7 = inlined_call_operand.hbm [shape: f32[16,128], index: 7, kind: output, shape index: {}]  }
   0x1   :  { %13 = vsyncpa [#allocation7], 0 }
   0x2   :  { %14 = vsyncpa [#allocation5], 0  ;;  %s478_s24 = smov [#allocation6]   ;;  %s479_s26 = smov [#allocation3]  }
   0x3   :  { %s32_s25 = sshll.u32 %s478_s24, 4  ;;  %s20_s27 = sshll.u32 %s479_s26, 4  ;;  %s33_s25 = int_to_ptr.vmem [resolvable:$true] %s32_s25  ;;  %s21_s27 = int_to_ptr.vmem [resolvable:$true] %s20_s27 }
   0x4   :  { %s400_s28 = scalar_lea.vmem %s33_s25, 512  ;;  %p405_p1 = scmp.lt.s32.totalorder %s33_s25, %s33_s25 }
   0x5   :  { %p401_p0 = scmp.ne.s32.totalorder %s33_s25, %s400_s28  ;;  %p406_p2 = scmp.lt.s32.totalorder %s400_s28, %s400_s28 }
   0x7   :  { %p407_p3 = por %p406_p2, %p405_p1 }
   0x9   :  { %p408_p4 = pnand %p407_p3, %p401_p0 }
   0xb   :  { %411 = shalt.err (!%p408_p4)
}
   0xc   :  { %s480_s29 = smov 128   ;;  %s481_s30 = smov 8  }
   0xd   :  { %38 = dma.hbm_to_vmem [thread:$0]  %s569_s1, 512, %s33_s25, [#allocation7], %s480_s29, %s480_s29, %s481_s30  }
   0xe   :  { %s420_s10 = scalar_lea.vmem %s21_s27, 256  ;;  %p425_p6 = scmp.lt.s32.totalorder %s21_s27, %s21_s27 }
   0xf   :  { %p421_p5 = scmp.ne.s32.totalorder %s21_s27, %s420_s10  ;;  %p426_p7 = scmp.lt.s32.totalorder %s420_s10, %s420_s10 }
  0x11   :  { %p427_p8 = por %p426_p7, %p425_p6 }
  0x13   :  { %p428_p9 = pnand %p427_p8, %p421_p5 }
  0x15   :  { %431 = shalt.err (!%p428_p9)
}
  0x16   :  { %26 = dma.hbm_to_vmem [thread:$0]  %s568_s0, 256, %s21_s27, [#allocation4], %s480_s29, %s480_s29, %s481_s30  }
  0x17   :  { %s482_s13 = smov [#allocation8]  }
  0x18   :  { %s50_s14 = sshll.u32 %s482_s13, 4  ;;  %s51_s14 = int_to_ptr.vmem [resolvable:$true] %s50_s14 }
  0x19   :  { %s440_s15 = scalar_lea.vmem %s51_s14, 256  ;;  %p445_p11 = scmp.lt.s32.totalorder %s51_s14, %s51_s14 }
  0x1a   :  { %p441_p10 = scmp.ne.s32.totalorder %s51_s14, %s440_s15  ;;  %p446_p12 = scmp.lt.s32.totalorder %s440_s15, %s440_s15 }
  0x1c   :  { %p447_p13 = por %p446_p12, %p445_p11 }
  0x1e   :  { %p448_p0 = pnand %p447_p13, %p441_p10 }
  0x20   :  { %451 = shalt.err (!%p448_p0)
}
  0x21   :  { %s483_s1 = smov 64   ;;  %s484_s16 = smov 4  }
  0x22   :  { %56 = dma.hbm_to_vmem [thread:$0]  %s573_s5, 256, %s51_s14, [#allocation7], %s483_s1, %s483_s1, %s484_s16  }
  0x23   :  { %472 = dma.done.wait [#allocation4], 256  }
  0x24   :  { %473 = vsyncadd [#allocation4], 4294967040 }
  0x25   :  { %474 = dma.done.wait [#allocation7], 768  }
  0x26   :  { %475 = vsyncadd [#allocation7], 4294966528  ;;  %vm86_vm0 = vcmask 261120   ;;  %v78_v0 = vld [vmem:[#allocation6 + $0x18] sm:$0xff]  ;;  %v77_v1 = vld [vmem:[#allocation6 + $0x10] sm:$0xff]  ;;  %v485_v34 = vmov 0.0  }
  0x27   :  { %352 = vmatprep.subr.mxu0 %v78_v0  ;;  %v76_v2 = vld [vmem:[#allocation6 + $0x8] sm:$0xff]  ;;  %v73_v3 = vld [vmem:[#allocation3] sm:$0xff]  ;;  %v75_v4 = vld [vmem:[#allocation6] sm:$0xff]  ;;  %363 = vmatprep.subr.bf16.mxu1 %v485_v34  ;;  %vm486_vm1 = vmmov 0   ;;  %vm231_vm2 = vcmask 257024  }
  0x28   :  { %353 = vmatpush3.msra.mxu0 %v78_v0  ;;  %360 = vmatprep.mubr.msk.f32.mxu0 %vm86_vm0, %v73_v3  ;;  %v74_v5 = vld [vmem:[#allocation3 + $0x8] sm:$0xff]  ;;  %v329_v6 = vld [vmem:[%s570_s2] ss:$0 sm:$0xff]  ;;  %v382_v35 = vld [vmem:[#allocation8] sm:$0xff]  }
  0x29   :  { %354 = vmatprep.subr.mxu0 %v77_v1  ;;  %v381_v33 = vld [vmem:[#allocation8 + $0x8] sm:$0xff]   ;;  %367 = vmatprep.mubr.msk.bf16.mxu1 %vm486_vm1, %v485_v34 }
  0x2a   :  { %355 = vmatpush3.msra.mxu0 %v77_v1  ;;  %364 = vmatpush3.bf16.msra.mxu1 %v381_v33  ;;  %v332_v43 = vld [vmem:[%s571_s3] ss:$0 sm:$0xff] }
  0x2b   :  { %356 = vmatprep.subr.mxu0 %v76_v2  ;;  %365 = vmatprep.subr.bf16.mxu1 %v485_v34  ;;  %v333_v45 = vld [vmem:[%s572_s4] ss:$0 sm:$0xff]  ;;  %s487_s4 = smov [#allocation9]  }
  0x2c   :  { %357 = vmatpush3.msra.mxu0 %v76_v2  ;;  %v336_v55 = vld [vmem:[%s574_s6] ss:$0 sm:$0xff]  ;;  %s316_s23 = sshll.u32 %s487_s4, 4  ;;  %s317_s23 = int_to_ptr.vmem [resolvable:$true] %s316_s23 }
  0x2d   :  { %358 = vmatprep.subr.mxu0 %v75_v4  ;;  %s452_s24 = scalar_lea.vmem %s317_s23, 256  ;;  %p457_p2 = scmp.lt.s32.totalorder %s317_s23, %s317_s23 }
  0x2e   :  { %359 = vmatpush3.msra.mxu0 %v75_v4  ;;  %366 = vmatpush3.bf16.msra.mxu1 %v382_v35  ;;  %p453_p1 = scmp.ne.s32.totalorder %s317_s23, %s452_s24  ;;  %p458_p3 = scmp.lt.s32.totalorder %s452_s24, %s452_s24 }
  0x2f   :  { %361 = vmatmul.mubr.msk.f32.vlgmr.msra.gmra.mxu0 %vm86_vm0, %v74_v5 }
  0x30   :  { %p459_p4 = por %p458_p3, %p457_p2 }
  0x32   :  { %p460_p5 = pnand %p459_p4, %p453_p1 }
  0xef   :  { %v362_v7 = vpop.f32.mrf.mxu0 }
  0xf0   :  { %v165_v8 = vadd.f32 %v362_v7, %v329_v6 }
  0xf1   :  { %v159_v9 = vpop.f32.mrf.mxu0 }
  0xf2   :  { %v171_v10 = vmul.f32 0.70710677, %v165_v8  ;;  %v160_v11 = vadd.f32 %v329_v6, %v159_v9  ;;  %v169_v18 = vmul.f32 0.5, %v165_v8 }
  0xf4   :  { %384 = verf.f32 %v171_v10  ;;  %v170_v12 = vmul.f32 0.70710677, %v160_v11  ;;  %v168_v15 = vmul.f32 0.5, %v160_v11 }
  0xf6   :  { %386 = verf.f32 %v170_v12 }
 0x101   :  { %v385_v13 = vpop.eup %384 }
 0x102   :  { %v175_v17 = vadd.f32 1.0, %v385_v13 }
 0x103   :  { %v387_v14 = vpop.eup %386 }
 0x104   :  { %v174_v16 = vadd.f32 1.0, %v387_v14  ;;  %v177_v21 = vmul.f32 %v175_v17, %v169_v18 }
 0x106   :  { %v176_v19 = vmul.f32 %v174_v16, %v168_v15  ;;  %v181_v22 = vsel %vm86_vm0, %v177_v21, 0.0 }
 0x108   :  { %v178_v20 = vsel %vm86_vm0, %v176_v19, 0.0 }
 0x109   :  { %179 = vadd.xlane.f32.xlu0 %v178_v20 }
 0x10d   :  { %182 = vadd.xlane.f32.xlu0 %v181_v22 }
 0x192   :  { %v180_v23 = vpop.xlane.xlu0 %179 }
 0x193   :  { %v185_v24 = vmul.f32 0.03125, %v180_v23 }
 0x195   :  { %v187_v25 = vsub.f32 %v176_v19, %v185_v24 }
 0x196   :  { %v183_v26 = vpop.xlane.xlu0 %182 }
 0x197   :  { %v186_v27 = vmul.f32 0.03125, %v183_v26  ;;  %v189_v28 = vmul.f32 %v187_v25, %v187_v25 }
 0x199   :  { %v188_v29 = vsub.f32 %v177_v21, %v186_v27  ;;  %v191_v30 = vsel %vm86_vm0, %v189_v28, 0.0 }
 0x19a   :  { %192 = vadd.xlane.f32.xlu1 %v191_v30 }
 0x19b   :  { %v190_v31 = vmul.f32 %v188_v29, %v188_v29 }
 0x19d   :  { %v194_v32 = vsel %vm86_vm0, %v190_v31, 0.0 }
 0x19e   :  { %195 = vadd.xlane.f32.xlu1 %v194_v32 }
 0x223   :  { %v193_v36 = vpop.xlane.xlu1 %192 }
 0x224   :  { %v197_v37 = vmul.f32 0.03125, %v193_v36 }
 0x226   :  { %v199_v38 = vadd.f32 1e-05, %v197_v37 }
 0x227   :  { %v196_v39 = vpop.xlane.xlu1 %195 }
 0x228   :  { %388 = vrsqrt.f32 %v199_v38  ;;  %v198_v40 = vmul.f32 0.03125, %v196_v39 }
 0x22a   :  { %v200_v41 = vadd.f32 1e-05, %v198_v40 }
 0x22c   :  { %390 = vrsqrt.f32 %v200_v41 }
 0x235   :  { %v389_v42 = vpop.eup %388 }
 0x236   :  { %v203_v44 = vmul.f32 %v389_v42, %v187_v25 }
 0x238   :  { %v212_v46 = vmul.f32 %v332_v43, %v203_v44 }
 0x239   :  { %v391_v47 = vpop.eup %390 }
 0x23a   :  { %v221_v48 = vadd.f32 %v333_v45, %v212_v46  ;;  %v204_v49 = vmul.f32 %v391_v47, %v188_v29 }
 0x23c   :  { %v341_v50 = vpack.c.bf16 %v221_v48, %v221_v48  ;;  %v213_v51 = vmul.f32 %v332_v43, %v204_v49 }
 0x23e   :  { %232 = vst.msk [vmem:[#allocation2] sm:$0xf] %vm231_vm2, %v341_v50  ;;  %v222_v52 = vadd.f32 %v333_v45, %v213_v51 }
 0x240   :  { %v342_v53 = vpack.c.bf16 %v222_v52, %v222_v52 }
 0x242   :  { %233 = vst.msk [vmem:[#allocation2 + $0x4] sm:$0xf] %vm231_vm2, %v342_v53 }
 0x249   :  { %v383_v54 = vld [vmem:[#allocation2] sm:$0xff]  }
 0x24a   :  { %368 = vmatmul.mubr.msk.bf16.vlgmr.msra.gmra.mxu1 %vm86_vm0, %v383_v54 }
 0x30a   :  { %v302_v56 = vpop.f32.mrf.mxu1 }
 0x30b   :  { %v303_v57 = vadd.f32 %v336_v55, %v302_v56 }
 0x30c   :  { %v369_v58 = vpop.f32.mrf.mxu1 }
 0x30d   :  { %309 = vst [vmem:[#allocation9] sm:$0xff] %v303_v57 }
 0x30e   :  { %v305_v59 = vpop.f32.mrf.mxu1 }
 0x30f   :  { %v306_v60 = vadd.f32 %v336_v55, %v305_v59 }
 0x310   :  { %v370_v61 = vpop.f32.mrf.mxu1 }
 0x311   :  { %310 = vst [vmem:[#allocation9 + $0x8] sm:$0xff] %v306_v60 }
 0x312   :  { %463 = shalt.err (!%p460_p5)
}
 0x313   :  { %322 = dma.vmem_to_hbm [thread:$0]  %s317_s23, 256, %s575_s7, [#allocation5], %s480_s29, %s480_s29, %s481_s30  }
 0x314   :  { %476 = dma.done.wait [#allocation5], 256  }
 0x315   :  { %477 = vsyncadd [#allocation5], 4294967040 }
 0x316   :  { %326 = vsyncpa [#allocation4], 1 }
 0x317   :  { %327 = vsyncpa [#allocation7], 1 }
 0x318   :  { %328 = vsyncpa [#allocation5], 1 }

</bundles_post_ra>
